<compile_context>
chip_gen: v6e
topology: v6e:2x2x1
jax: 0.10.0
libtpu: 0.0.40
codegen_flags: <defaults>
</compile_context>

<pallas_src>
import functools

import jax
import jax.numpy as jnp
from jax import lax
from jax.experimental import pallas as pl
from jax.experimental.pallas import tpu as pltpu

EPS = 1e-5          # torch.nn.InstanceNorm1d default
LANES = 128         # TPU lane width


# --------------------------------------------------------------------------
# Hardware-budget helpers
# --------------------------------------------------------------------------
def _round_up(v, m):
    return ((v + m - 1) // m) * m


def _vmem_capacity_bytes():
    try:
        info = pltpu.get_tpu_info()
        cap = int(getattr(info, "vmem_capacity_bytes", 0) or 0)
        if cap > 0:
            return cap
    except Exception:
        pass
    return 64 << 20   # conservative fallback (v7x per-core VMEM)


def _budget():
    cap = _vmem_capacity_bytes()
    vmem_limit = max(32 << 20, min(96 << 20, (cap * 3) // 4))
    fused_grid_max = vmem_limit // 3      # x bytes (native dtype), output-grid fused path
    fused_simple_max = vmem_limit // 6    # x bytes, gridless fused path (full f32 temps)
    tile_target = (4 << 20) if cap <= (64 << 20) else (8 << 20)
    return vmem_limit, fused_grid_max, fused_simple_max, tile_target


def _lane_group(N, C):
    """Rows folded into one 128-wide packed row (1 = no packing)."""
    if C < LANES and LANES % C == 0 and N % (LANES // C) == 0:
        return LANES // C
    # TODO(synk): pad N (and/or the lane dim) so odd shapes also hit the
    # lane-dense path instead of falling back to W = C < 128.
    return 1


def _pick_fused_tile(np_rows, w, itemsize):
    """Output row-tile for the fused (phase, tile) grid; must divide Np."""
    if np_rows % 8 != 0:
        return None
    target = max(8, ((2 << 20) // (w * itemsize)) // 8 * 8)   # ~2 MiB output tiles
    t = min(target, np_rows)
    t -= t % 8
    while t >= 8:
        if np_rows % t == 0:
            # Keep grid-step overhead negligible (<= 16 tiles -> 32 steps).
            return t if (np_rows // t) <= 16 else None
        t -= 8
    return None


def _fold_lane_groups(s, sq, group, feat):
    """Sum the `group` packed copies of each feature column (in-kernel, XLU rolls).

    s/sq are (1, W) per-lane partials of the packed view where lane j holds
    data of column j % feat.  Adding lane-rolls by k*feat leaves every lane
    holding its own column's total, already broadcast across W lanes.
    """
    s_w, sq_w = s, sq
    for k in range(1, group):
        s_w = s_w + pltpu.roll(s, shift=k * feat, axis=1)
        sq_w = sq_w + pltpu.roll(sq, shift=k * feat, axis=1)
    return s_w, sq_w


# --------------------------------------------------------------------------
# Fused path A: (phase, tile) grid, input resident, output tiled.
#   phase 0: accumulate per-tile sums into scratch, finalize mean/rstd.
#   phase 1: normalize tile t and write it (writeback overlaps compute).
# One HBM read + one HBM write of x; per-tile f32 temps only.
# --------------------------------------------------------------------------
def _fused_grid_kernel(x_ref, o_ref, sum_sc, sq_sc, mean_sc, rstd_sc, *,
                       group, feat, n_rows, tile_rows, eps):
    p = pl.program_id(0)
    t = pl.program_id(1)
    nt = pl.num_programs(1)

    @pl.when(p == 0)
    def _stats_phase():
        @pl.when(t == 0)
        def _():
            sum_sc[...] = jnp.zeros_like(sum_sc)
            sq_sc[...] = jnp.zeros_like(sq_sc)

        start = pl.multiple_of(t * tile_rows, 8)
        x = x_ref[pl.ds(start, tile_rows), :].astype(jnp.float32)
        # Accumulate into (8, W) sublane groups: per-tile work is pure VPU
        # adds; the cross-sublane (XLU) reduction happens once, at finalize.
        xg = x.reshape(tile_rows // 8, 8, x.shape[1])
        sum_sc[...] += jnp.sum(xg, axis=0)
        sq_sc[...] += jnp.sum(xg * xg, axis=0)

        @pl.when(t == nt - 1)
        def _():
            s = jnp.sum(sum_sc[...], axis=0, keepdims=True)     # (1, W)
            sq = jnp.sum(sq_sc[...], axis=0, keepdims=True)
            s_w, sq_w = _fold_lane_groups(s, sq, group, feat)
            n = jnp.float32(n_rows)
            mean = s_w / n
            # TODO(synk): E[x^2]-mean^2 loses accuracy when |mean| >> std; the
            # clamp keeps it finite (a shifted accumulation would fix extremes).
            var = jnp.maximum(sq_w / n - mean * mean, 0.0)
            mean_sc[...] = mean
            rstd_sc[...] = lax.rsqrt(var + eps)

    @pl.when(p == 1)
    def _norm_phase():
        start = pl.multiple_of(t * tile_rows, 8)
        x = x_ref[pl.ds(start, tile_rows), :].astype(jnp.float32)
        o_ref[...] = ((x - mean_sc[...]) * rstd_sc[...]).astype(o_ref.dtype)


# --------------------------------------------------------------------------
# Fused path B: gridless whole-block kernel for small / oddly-shaped x.
# --------------------------------------------------------------------------
def _fused_simple_kernel(x_ref, o_ref, *, group, feat, n_rows, eps):
    xf = x_ref[...].astype(jnp.float32)                 # (Np, W)
    s = jnp.sum(xf, axis=0, keepdims=True)              # (1, W)
    sq = jnp.sum(xf * xf, axis=0, keepdims=True)
    s_w, sq_w = _fold_lane_groups(s, sq, group, feat)
    n = jnp.float32(n_rows)
    mean = s_w / n
    var = jnp.maximum(sq_w / n - mean * mean, 0.0)
    rstd = lax.rsqrt(var + eps)
    # Re-read from the ref for the store so the big f32 temp need not stay live.
    o_ref[...] = ((x_ref[...].astype(jnp.float32) - mean) * rstd).astype(o_ref.dtype)


# --------------------------------------------------------------------------
# Streaming two-pass path (x too large for VMEM).
# Pass 1: per-core (8, W) partial sums / sums-of-squares.  The leading size-2
# "parallel" axis lets v7x's two TensorCores each stream half of the rows.
# --------------------------------------------------------------------------
def _stats_kernel(x_ref, sum_ref, sq_ref, *, tile_rows, n_packed_rows,
                  t_half, need_mask):
    c = pl.program_id(0)
    i = pl.program_id(1)

    @pl.when(i == 0)
    def _():
        sum_ref[...] = jnp.zeros_like(sum_ref)
        sq_ref[...] = jnp.zeros_like(sq_ref)

    x = x_ref[...].astype(jnp.float32)                  # (tile_rows, W)
    if need_mask:
        # Zero rows beyond the real data (ragged last tile and, when the tile
        # count is odd, the duplicated/clamped tile on the second core).
        tile_id = c * t_half + i
        row = lax.broadcasted_iota(jnp.int32, x.shape, 0) + tile_id * tile_rows
        x = jnp.where(row < n_packed_rows, x, 0.0)

    xg = x.reshape(tile_rows // 8, 8, x.shape[1])
    sum_ref[...] += jnp.sum(xg, axis=0)
    sq_ref[...] += jnp.sum(xg * xg, axis=0)


def _normalize_kernel(x_ref, mean_ref, rstd_ref, o_ref):
    x = x_ref[...].astype(jnp.float32)
    o_ref[...] = ((x - mean_ref[...]) * rstd_ref[...]).astype(o_ref.dtype)


# --------------------------------------------------------------------------
# Wrapper
# --------------------------------------------------------------------------
def batch_norm(x, *, eps=EPS, tile_rows=None, force_two_pass=False):
    """Pallas equivalent of BatchNorm(in_dim, momentum).forward(x) for x:(N, C)."""
    N, C = x.shape
    G = _lane_group(N, C)
    W = G * C
    Np = N // G
    xp = x.reshape(Np, W)                    # lane-dense packed view (no data movement)
    itemsize = x.dtype.itemsize
    x_bytes = N * C * itemsize

    vmem_limit, fused_grid_max, fused_simple_max, tile_target = _budget()

    # ---- fused, output-grid path: 1 HBM read + 1 HBM write, write overlap ----
    if (not force_two_pass) and x_bytes <= fused_grid_max:
        f_tile = _pick_fused_tile(Np, W, itemsize)
        if f_tile is not None:
            n_tiles = Np // f_tile
            out_p = pl.pallas_call(
                functools.partial(_fused_grid_kernel, group=G, feat=C,
                                  n_rows=N, tile_rows=f_tile, eps=eps),
                out_shape=jax.ShapeDtypeStruct((Np, W), x.dtype),
                grid_spec=pltpu.PrefetchScalarGridSpec(
                    num_scalar_prefetch=0,
                    grid=(2, n_tiles),                      # (phase, tile)
                    in_specs=[pl.BlockSpec((Np, W), lambda p, t: (0, 0))],
                    out_specs=pl.BlockSpec((f_tile, W), lambda p, t: (p * t, 0)),
                    scratch_shapes=[
                        pltpu.VMEM((8, W), jnp.float32),   # sum accumulator
                        pltpu.VMEM((8, W), jnp.float32),   # sum-of-squares accumulator
                        pltpu.VMEM((1, W), jnp.float32),   # mean
                        pltpu.VMEM((1, W), jnp.float32),   # rstd
                    ]),
                compiler_params=pltpu.CompilerParams(
                    dimension_semantics=("arbitrary", "arbitrary"),
                    vmem_limit_bytes=vmem_limit),
                cost_estimate=pl.CostEstimate(
                    flops=5 * N * C, transcendentals=W,
                    bytes_accessed=2 * x_bytes),
            )(xp)
            return out_p.reshape(N, C)

    # ---- fused, gridless fallback for small / oddly-shaped x ----
    if (not force_two_pass) and x_bytes <= fused_simple_max:
        out_p = pl.pallas_call(
            functools.partial(_fused_simple_kernel, group=G, feat=C,
                              n_rows=N, eps=eps),
            out_shape=jax.ShapeDtypeStruct((Np, W), x.dtype),
            compiler_params=pltpu.CompilerParams(vmem_limit_bytes=vmem_limit),
            cost_estimate=pl.CostEstimate(
                flops=5 * N * C, transcendentals=W, bytes_accessed=2 * x_bytes),
        )(xp)
        return out_p.reshape(N, C)

    # ---- streaming two-pass path ----
    if tile_rows is None:
        tile_rows = max(8, (tile_target // (W * itemsize)) // 8 * 8)
        tile_rows = min(tile_rows, _round_up(Np, 8))
        if Np > 16:   # keep >= 2 row tiles so v7x can shard the normalize pass
            tile_rows = min(tile_rows, _round_up(pl.cdiv(Np, 2), 8))
        tile_rows = max(8, tile_rows)
    assert tile_rows % 8 == 0, "row tile must be a multiple of 8 sublanes"

    t_total = pl.cdiv(Np, tile_rows)
    t_half = pl.cdiv(t_total, 2)
    need_mask = (Np % tile_rows != 0) or (2 * t_half != t_total)

    # Pass 1: per-core partial sums (2-way row split; single-TC chips just loop).
    psum, psq = pl.pallas_call(
        functools.partial(_stats_kernel, tile_rows=tile_rows, n_packed_rows=Np,
                          t_half=t_half, need_mask=need_mask),
        out_shape=(jax.ShapeDtypeStruct((16, W), jnp.float32),
                   jax.ShapeDtypeStruct((16, W), jnp.float32)),
        grid_spec=pltpu.PrefetchScalarGridSpec(
            num_scalar_prefetch=0,
            grid=(2, t_half),
            in_specs=[pl.BlockSpec(
                (tile_rows, W),
                lambda c, i: (jnp.minimum(c * t_half + i, t_total - 1), 0))],
            out_specs=[pl.BlockSpec((8, W), lambda c, i: (c, 0)),
                       pl.BlockSpec((8, W), lambda c, i: (c, 0))]),
        compiler_params=pltpu.CompilerParams(
            dimension_semantics=("parallel", "arbitrary"),
            vmem_limit_bytes=vmem_limit),
        cost_estimate=pl.CostEstimate(
            flops=3 * N * C, transcendentals=0,
            bytes_accessed=x_bytes + 2 * 16 * W * 4),
    )(xp)

    # Tiny XLA-level finalize: fold lane groups, combine per-core partials,
    # compute per-column mean and 1/sqrt(var + eps).
    s_col = jnp.sum(psum.reshape(16, G, C), axis=(0, 1))
    sq_col = jnp.sum(psq.reshape(16, G, C), axis=(0, 1))
    n = jnp.float32(N)
    mean_c = s_col / n
    # TODO(synk): E[x^2]-mean^2 loses accuracy when |mean| >> std; clamp keeps
    # it finite (a shifted/two-pass variance would fix the extreme case).
    var_c = jnp.maximum(sq_col / n - mean_c * mean_c, 0.0)
    rstd_c = lax.rsqrt(var_c + eps)
    mean_w = jnp.tile(mean_c, G).reshape(1, W)
    rstd_w = jnp.tile(rstd_c, G).reshape(1, W)

    # Pass 2: elementwise normalization, big lane-dense tiles, parallel axis.
    out_p = pl.pallas_call(
        _normalize_kernel,
        out_shape=jax.ShapeDtypeStruct((Np, W), x.dtype),
        grid_spec=pltpu.PrefetchScalarGridSpec(
            num_scalar_prefetch=0,
            grid=(t_total,),
            in_specs=[pl.BlockSpec((tile_rows, W), lambda i: (i, 0)),
                      pl.BlockSpec((1, W), lambda i: (0, 0)),
                      pl.BlockSpec((1, W), lambda i: (0, 0))],
            out_specs=pl.BlockSpec((tile_rows, W), lambda i: (i, 0))),
        compiler_params=pltpu.CompilerParams(
            dimension_semantics=("parallel",),
            vmem_limit_bytes=vmem_limit),
        cost_estimate=pl.CostEstimate(
            flops=2 * N * C, transcendentals=0, bytes_accessed=2 * x_bytes),
    )(xp, mean_w, rstd_w)
    return out_p.reshape(N, C)


if __name__ == "__main__":
    key = jax.random.PRNGKey(0)
    k1, k2, k3, k4 = jax.random.split(key, 4)

    def ref_bn(x):
        xf = x.astype(jnp.float32)
        m = jnp.mean(xf, axis=0, keepdims=True)
        v = jnp.mean((xf - m) ** 2, axis=0, keepdims=True)   # biased variance
        return ((xf - m) / jnp.sqrt(v + EPS)).astype(x.dtype)

    # 1) Fused output-grid path (BatchNorm(in_dim=32) on 256 points).
    x1 = jax.random.normal(k1, (256, 32), dtype=jnp.float32)
    y1 = jax.block_until_ready(batch_norm(x1))
    assert jnp.allclose(y1, ref_bn(x1), atol=1e-3, rtol=1e-3), "fused path mismatch"

    # 2) Streaming two-pass path (forced), aligned tiles, shifted data.
    x2 = jax.random.normal(k2, (1024, 32), dtype=jnp.float32) * 3.0 + 5.0
    y2 = jax.block_until_ready(batch_norm(x2, force_two_pass=True, tile_rows=64))
    assert jnp.allclose(y2, ref_bn(x2), atol=1e-3, rtol=1e-3), "two-pass path mismatch"

    # 3) Streaming two-pass path with a ragged last tile + 2-way core split.
    x3 = jax.random.normal(k3, (1000, 32), dtype=jnp.float32)
    y3 = jax.block_until_ready(batch_norm(x3, force_two_pass=True, tile_rows=64))
    assert jnp.allclose(y3, ref_bn(x3), atol=1e-3, rtol=1e-3), "ragged path mismatch"

    # 4) No-packing fallback (in_dim does not divide 128 lanes).
    x4 = jax.random.normal(k4, (200, 24), dtype=jnp.float32)
    y4 = jax.block_until_ready(batch_norm(x4))
    assert jnp.allclose(y4, ref_bn(x4), atol=1e-3, rtol=1e-3), "fallback path mismatch"

    print("KERNEL_OK")
</pallas_src>

<mosaic_0001>
module attributes {stable_mosaic.version = 11 : i64} {
  func.func @_fused_grid_kernel(%arg0: i32, %arg1: i32, %arg2: memref<64x128xf32, #tpu.memory_space<vmem>>, %arg3: memref<64x128xf32, #tpu.memory_space<vmem>>, %arg4: memref<8x128xf32, #tpu.memory_space<vmem>>, %arg5: memref<8x128xf32, #tpu.memory_space<vmem>>, %arg6: memref<1x128xf32, #tpu.memory_space<vmem>>, %arg7: memref<1x128xf32, #tpu.memory_space<vmem>>) attributes {dimension_semantics = [#tpu.dimension_semantics<arbitrary>, #tpu.dimension_semantics<arbitrary>], iteration_bounds = array<i64: 2, 1>, scalar_prefetch = 0 : i64, scratch_operands = 4 : i64, tpu.core_type = #tpu.core_type<tc>, window_params = [{pipeline_mode = #tpu.pipeline_mode<synchronous>, transform_indices = @transform_0, window_bounds = array<i64: 64, 128>}, {transform_indices = @transform_1, window_bounds = array<i64: 64, 128>}]} {
    %c0_i32 = arith.constant 0 : i32
    %0 = arith.cmpi eq, %arg0, %c0_i32 : i32
    %1 = arith.extui %0 : i1 to i32
    %c0_i32_0 = arith.constant 0 : i32
    %2 = arith.cmpi ne, %1, %c0_i32_0 : i32
    scf.if %2 {
      %c0_i32_2 = arith.constant 0 : i32
      %6 = arith.cmpi eq, %arg1, %c0_i32_2 : i32
      %7 = arith.extui %6 : i1 to i32
      %c0_i32_3 = arith.constant 0 : i32
      %8 = arith.cmpi ne, %7, %c0_i32_3 : i32
      scf.if %8 {
        %cst_15 = arith.constant 0.000000e+00 : f32
        %26 = vector.broadcast %cst_15 : f32 to vector<8x128xf32>
        %c0_16 = arith.constant 0 : index
        %c0_17 = arith.constant 0 : index
        %27 = vector.load %arg4[%c0_16, %c0_17] : memref<8x128xf32, #tpu.memory_space<vmem>>, vector<8x128xf32>
        tpu.vector_store %arg4[%c0_16, %c0_17], %26 {strides = array<i32>} : memref<8x128xf32, #tpu.memory_space<vmem>>, vector<8x128xf32>,
        %cst_18 = arith.constant 0.000000e+00 : f32
        %28 = vector.broadcast %cst_18 : f32 to vector<8x128xf32>
        %c0_19 = arith.constant 0 : index
        %c0_20 = arith.constant 0 : index
        %29 = vector.load %arg5[%c0_19, %c0_20] : memref<8x128xf32, #tpu.memory_space<vmem>>, vector<8x128xf32>
        tpu.vector_store %arg5[%c0_19, %c0_20], %28 {strides = array<i32>} : memref<8x128xf32, #tpu.memory_space<vmem>>, vector<8x128xf32>,
      } else {
      }
      %c64_i32 = arith.constant 64 : i32
      %9 = arith.muli %arg1, %c64_i32 : i32
      %10 = tpu.assume_multiple %9, 8 : i32
      %11 = arith.index_cast %10 : i32 to index
      %c0 = arith.constant 0 : index
      %12 = vector.load %arg2[%11, %c0] : memref<64x128xf32, #tpu.memory_space<vmem>>, vector<64x128xf32>
      %13 = vector.shape_cast %12 : vector<64x128xf32> to vector<8x8x128xf32>
      %c0_4 = arith.constant 0 : index
      %c0_5 = arith.constant 0 : index
      %14 = vector.load %arg4[%c0_4, %c0_5] : memref<8x128xf32, #tpu.memory_space<vmem>>, vector<8x128xf32>
      %cst = arith.constant dense<0.000000e+00> : vector<8x128xf32>
      %15 = vector.multi_reduction <add>, %13, %cst [0] : vector<8x8x128xf32> to vector<8x128xf32>
      %16 = arith.addf %14, %15 : vector<8x128xf32>
      %c0_6 = arith.constant 0 : index
      %c0_7 = arith.constant 0 : index
      %17 = vector.load %arg4[%c0_6, %c0_7] : memref<8x128xf32, #tpu.memory_space<vmem>>, vector<8x128xf32>
      tpu.vector_store %arg4[%c0_6, %c0_7], %16 {strides = array<i32>} : memref<8x128xf32, #tpu.memory_space<vmem>>, vector<8x128xf32>,
      %c0_8 = arith.constant 0 : index
      %c0_9 = arith.constant 0 : index
      %18 = vector.load %arg5[%c0_8, %c0_9] : memref<8x128xf32, #tpu.memory_space<vmem>>, vector<8x128xf32>
      %19 = arith.mulf %13, %13 : vector<8x8x128xf32>
      %cst_10 = arith.constant dense<0.000000e+00> : vector<8x128xf32>
      %20 = vector.multi_reduction <add>, %19, %cst_10 [0] : vector<8x8x128xf32> to vector<8x128xf32>
      %21 = arith.addf %18, %20 : vector<8x128xf32>
      %c0_11 = arith.constant 0 : index
      %c0_12 = arith.constant 0 : index
      %22 = vector.load %arg5[%c0_11, %c0_12] : memref<8x128xf32, #tpu.memory_space<vmem>>, vector<8x128xf32>
      tpu.vector_store %arg5[%c0_11, %c0_12], %21 {strides = array<i32>} : memref<8x128xf32, #tpu.memory_space<vmem>>, vector<8x128xf32>,
      %c0_i32_13 = arith.constant 0 : i32
      %23 = arith.cmpi eq, %arg1, %c0_i32_13 : i32
      %24 = arith.extui %23 : i1 to i32
      %c0_i32_14 = arith.constant 0 : i32
      %25 = arith.cmpi ne, %24, %c0_i32_14 : i32
      scf.if %25 {
        %c0_15 = arith.constant 0 : index
        %c0_16 = arith.constant 0 : index
        %26 = vector.load %arg4[%c0_15, %c0_16] : memref<8x128xf32, #tpu.memory_space<vmem>>, vector<8x128xf32>
        %cst_17 = arith.constant dense<0.000000e+00> : vector<128xf32>
        %27 = vector.multi_reduction <add>, %26, %cst_17 [0] : vector<8x128xf32> to vector<128xf32>
        %28 = vector.shape_cast %27 : vector<128xf32> to vector<1x128xf32>
        %c0_18 = arith.constant 0 : index
        %c0_19 = arith.constant 0 : index
        %29 = vector.load %arg5[%c0_18, %c0_19] : memref<8x128xf32, #tpu.memory_space<vmem>>, vector<8x128xf32>
        %cst_20 = arith.constant dense<0.000000e+00> : vector<128xf32>
        %30 = vector.multi_reduction <add>, %29, %cst_20 [0] : vector<8x128xf32> to vector<128xf32>
        %31 = vector.shape_cast %30 : vector<128xf32> to vector<1x128xf32>
        %c32_i32 = arith.constant 32 : i32
        %32 = tpu.dynamic_rotate %28 by %c32_i32 dim 1 : vector<1x128xf32>, i32 -> vector<1x128xf32>
        %33 = arith.addf %28, %32 : vector<1x128xf32>
        %c32_i32_21 = arith.constant 32 : i32
        %34 = tpu.dynamic_rotate %31 by %c32_i32_21 dim 1 : vector<1x128xf32>, i32 -> vector<1x128xf32>
        %35 = arith.addf %31, %34 : vector<1x128xf32>
        %c64_i32_22 = arith.constant 64 : i32
        %36 = tpu.dynamic_rotate %28 by %c64_i32_22 dim 1 : vector<1x128xf32>, i32 -> vector<1x128xf32>
        %37 = arith.addf %33, %36 : vector<1x128xf32>
        %c64_i32_23 = arith.constant 64 : i32
        %38 = tpu.dynamic_rotate %31 by %c64_i32_23 dim 1 : vector<1x128xf32>, i32 -> vector<1x128xf32>
        %39 = arith.addf %35, %38 : vector<1x128xf32>
        %c96_i32 = arith.constant 96 : i32
        %40 = tpu.dynamic_rotate %28 by %c96_i32 dim 1 : vector<1x128xf32>, i32 -> vector<1x128xf32>
        %41 = arith.addf %37, %40 : vector<1x128xf32>
        %c96_i32_24 = arith.constant 96 : i32
        %42 = tpu.dynamic_rotate %31 by %c96_i32_24 dim 1 : vector<1x128xf32>, i32 -> vector<1x128xf32>
        %43 = arith.addf %39, %42 : vector<1x128xf32>
        %cst_25 = arith.constant 2.560000e+02 : f32
        %44 = vector.broadcast %cst_25 : f32 to vector<1x128xf32>
        %45 = arith.divf %41, %44 : vector<1x128xf32>
        %cst_26 = arith.constant 2.560000e+02 : f32
        %46 = vector.broadcast %cst_26 : f32 to vector<1x128xf32>
        %47 = arith.divf %43, %46 : vector<1x128xf32>
        %48 = arith.mulf %45, %45 : vector<1x128xf32>
        %49 = arith.subf %47, %48 : vector<1x128xf32>
        %cst_27 = arith.constant 0.000000e+00 : f32
        %50 = vector.broadcast %cst_27 : f32 to vector<1x128xf32>
        %51 = arith.maximumf %49, %50 : vector<1x128xf32>
        %c0_28 = arith.constant 0 : index
        %c0_29 = arith.constant 0 : index
        %52 = vector.load %arg6[%c0_28, %c0_29] : memref<1x128xf32, #tpu.memory_space<vmem>>, vector<1x128xf32>
        tpu.vector_store %arg6[%c0_28, %c0_29], %45 {strides = array<i32>} : memref<1x128xf32, #tpu.memory_space<vmem>>, vector<1x128xf32>,
        %cst_30 = arith.constant 9.99999974E-6 : f32
        %53 = vector.broadcast %cst_30 : f32 to vector<1x128xf32>
        %54 = arith.addf %51, %53 : vector<1x128xf32>
        %55 = math.rsqrt %54 : vector<1x128xf32>
        %c0_31 = arith.constant 0 : index
        %c0_32 = arith.constant 0 : index
        %56 = vector.load %arg7[%c0_31, %c0_32] : memref<1x128xf32, #tpu.memory_space<vmem>>, vector<1x128xf32>
        tpu.vector_store %arg7[%c0_31, %c0_32], %55 {strides = array<i32>} : memref<1x128xf32, #tpu.memory_space<vmem>>, vector<1x128xf32>,
      } else {
      }
    } else {
    }
    %c1_i32 = arith.constant 1 : i32
    %3 = arith.cmpi eq, %arg0, %c1_i32 : i32
    %4 = arith.extui %3 : i1 to i32
    %c0_i32_1 = arith.constant 0 : i32
    %5 = arith.cmpi ne, %4, %c0_i32_1 : i32
    scf.if %5 {
      %c64_i32 = arith.constant 64 : i32
      %6 = arith.muli %arg1, %c64_i32 : i32
      %7 = tpu.assume_multiple %6, 8 : i32
      %8 = arith.index_cast %7 : i32 to index
      %c0 = arith.constant 0 : index
      %9 = vector.load %arg2[%8, %c0] : memref<64x128xf32, #tpu.memory_space<vmem>>, vector<64x128xf32>
      %c0_2 = arith.constant 0 : index
      %c0_3 = arith.constant 0 : index
      %10 = vector.load %arg6[%c0_2, %c0_3] : memref<1x128xf32, #tpu.memory_space<vmem>>, vector<1x128xf32>
      %11 = vector.broadcast %10 : vector<1x128xf32> to vector<64x128xf32>
      %12 = arith.subf %9, %11 : vector<64x128xf32>
      %c0_4 = arith.constant 0 : index
      %c0_5 = arith.constant 0 : index
      %13 = vector.load %arg7[%c0_4, %c0_5] : memref<1x128xf32, #tpu.memory_space<vmem>>, vector<1x128xf32>
      %14 = vector.broadcast %13 : vector<1x128xf32> to vector<64x128xf32>
      %15 = arith.mulf %12, %14 : vector<64x128xf32>
      %c0_6 = arith.constant 0 : index
      %c0_7 = arith.constant 0 : index
      %16 = vector.load %arg3[%c0_6, %c0_7] : memref<64x128xf32, #tpu.memory_space<vmem>>, vector<64x128xf32>
      tpu.vector_store %arg3[%c0_6, %c0_7], %15 {strides = array<i32>} : memref<64x128xf32, #tpu.memory_space<vmem>>, vector<64x128xf32>,
    } else {
    }
    return
  }
  func.func @transform_0(%arg0: i32, %arg1: i32) -> (i32, i32) {
    %c0_i32 = arith.constant 0 : i32
    %c0_i32_0 = arith.constant 0 : i32
    %c0_i32_1 = arith.constant 0 : i32
    return %c0_i32, %c0_i32_0 : i32, i32
  }
  func.func @transform_1(%arg0: i32, %arg1: i32) -> (i32, i32) {
    %0 = arith.muli %arg0, %arg1 : i32
    %c0_i32 = arith.constant 0 : i32
    %c0_i32_0 = arith.constant 0 : i32
    return %0, %c0_i32 : i32, i32
  }
}

</mosaic_0001>

<bundles_post_ra>
// kernel: tpu_custom_call.1
= control target key start
LH: loop header
LB: loop body
LE: loop exit
PB: predicated region body
PF: predicated region fallthrough
CT: control target
= control target key end

     0   :  { %6 = vsyncpa [#allocation7], 0  ;;  %s603_s0 = inlined_call_operand.hbm [shape: f32[64,128], index: 0, kind: input, shape index: {}]   ;;  %s604_s1 = inlined_call_operand.hbm [shape: f32[64,128], index: 1, kind: output, shape index: {}]  }
   0x1   :  { %7 = vsyncpa [#allocation8], 0 }
   0x2   :  { %9 = vsyncpa [#allocation8 + $0x1], 0  ;;  %s531_s6 = smov 0   ;;  %s533_s7 = smov 0  }
   0x3   :  { %s535_s8 = smov 0  }
   0x4 LB: > { %s360_s9 = sadd.s32 4294967295, %s510_s8   ;;  %s361_s10 = sadd.s32 4294967294, %s510_s8   ;;  %s510_s8 = sphi %s535_s8, %s15_s8   ;;  %s506_s7 = sphi %s533_s7, %s609_s7   ;;  %s502_s6 = sphi %s531_s6, %s608_s6  }
   0x5   : > { %s27_s11 = sadd.s32 1, %s506_s7  ;;  %p362_p0 = scmp.ge.s32.totalorder %s510_s8, 1 }
   0x6   : > { %p29_p1 = scmp.ge.s32.totalorder %s27_s11, 2  ;;  %p81_p2 = scmp.lt.s32.totalorder %s510_s8, 3 }
   0x7   : > { %p553_p3 = scmp.eq.s32.totalorder %s360_s9, 0  ;;  %s512_s14 = smov [#allocation6]  }
   0x8   : > { %s611_s11 = smov (%p29_p1, %s27_s11), 0  ;;  %p559_p4 = pnand %p362_p0, %p81_p2 }
   0x9   : > { %s93_s15 = sshll.u32 %s512_s14, 4  ;;  %s94_s15 = int_to_ptr.vmem [resolvable:$true] %s93_s15 }
   0xa   : > { %p382_p5 = pneg %p559_p4  ;;  %s441_s16 = scalar_lea.vmem %s94_s15, 1024 }
   0xb   : > { %p442_p8 = scmp.ne.s32.totalorder %s94_s15, %s441_s16  ;;  %p449_p11 = scmp.lt.s32.totalorder %s94_s15, %s94_s15 }
   0xc   : > { %p383_p6 = pnand %p553_p3, %p382_p5  ;;  %p450_p12 = scmp.lt.s32.totalorder %s441_s16, %s441_s16 }
   0xe   : > { %p432_p7 = pneg %p383_p6  ;;  %p451_p13 = por %p450_p12, %p449_p11 }
  0x10   : > { %p444_p9 = pnand %p442_p8, %p432_p7 }
  0x12   : > { %p445_p10 = pneg %p444_p9 }
  0x14   : > { %p452_p0 = pnand %p451_p13, %p445_p10 }
  0x16   : > { %455 = shalt.err (!%p452_p0)
}
  0x17   : > { %s513_s17 = smov 128   ;;  %s514_s18 = smov 8  }
  0x18   : > { %385 = dma.hbm_to_vmem [thread:$0]  (!%p383_p6), %s603_s0, 1024, %s94_s15, [#allocation7], %s513_s17, %s513_s17, %s514_s18  }
  0x19   : > { %109 = sbr.rel (%p559_p4) target bundleno = 246 (0xf6), region = 24 }
  0x1e   : > { %493 = dma.done.wait (%p553_p3), [#allocation7], 1024  }
  0x1f   : > { %495 = vsyncadd (%p553_p3), [#allocation7], 4294966272  ;;  %p366_p1 = scmp.ne.s32.totalorder %s502_s6, 0 }
  0x20   : > { %s515_s21 = smov (!%p366_p1), 64   ;;  %s516_s22 = smov (!%p366_p1), 32  }
  0x21   : > { %129 = sbr.rel (%p366_p1) target bundleno = 215 (0xd7), region = 32  ;;  %s517_s23 = smov (!%p366_p1), 96  }
  0x26   : > { %v138_v0 = vld [vmem:[#allocation6] sm:$0xff]  ;;  %v139_v1 = vld [vmem:[#allocation6 + $0x8] sm:$0xff]  ;;  %v140_v2 = vld [vmem:[#allocation6 + $0x10] sm:$0xff] }
  0x27   : > { %v147_v3 = vadd.f32 %v139_v1, %v138_v0  ;;  %v157_v4 = vmul.f32 %v138_v0, %v138_v0  ;;  %v158_v5 = vmul.f32 %v139_v1, %v139_v1  ;;  %v159_v6 = vmul.f32 %v140_v2, %v140_v2  ;;  %v141_v7 = vld [vmem:[#allocation6 + $0x18] sm:$0xff]  ;;  %v142_v11 = vld [vmem:[#allocation6 + $0x20] sm:$0xff]  ;;  %v143_v15 = vld [vmem:[#allocation6 + $0x28] sm:$0xff] }
  0x28   : > { %v160_v9 = vmul.f32 %v141_v7, %v141_v7  ;;  %v161_v13 = vmul.f32 %v142_v11, %v142_v11  ;;  %v162_v17 = vmul.f32 %v143_v15, %v143_v15  ;;  %v144_v19 = vld [vmem:[#allocation6 + $0x30] sm:$0xff]  ;;  %v145_v23 = vld [vmem:[#allocation6 + $0x38] sm:$0xff] }
  0x29   : > { %v148_v8 = vadd.f32 %v147_v3, %v140_v2  ;;  %v165_v10 = vadd.f32 %v158_v5, %v157_v4  ;;  %v163_v21 = vmul.f32 %v144_v19, %v144_v19  ;;  %v164_v25 = vmul.f32 %v145_v23, %v145_v23 }
  0x2b   : > { %v149_v12 = vadd.f32 %v148_v8, %v141_v7  ;;  %v166_v14 = vadd.f32 %v165_v10, %v159_v6 }
  0x2d   : > { %v150_v16 = vadd.f32 %v149_v12, %v142_v11  ;;  %v167_v18 = vadd.f32 %v166_v14, %v160_v9 }
  0x2f   : > { %v151_v20 = vadd.f32 %v150_v16, %v143_v15  ;;  %v168_v22 = vadd.f32 %v167_v18, %v161_v13 }
  0x31   : > { %v152_v24 = vadd.f32 %v151_v20, %v144_v19  ;;  %v169_v26 = vadd.f32 %v168_v22, %v162_v17 }
  0x33   : > { %v153_v27 = vadd.f32 %v152_v24, %v145_v23  ;;  %v170_v28 = vadd.f32 %v169_v26, %v163_v21 }
  0x35   : > { %v178_v29 = vrot.slane %v153_v27, 4  ;;  %v171_v30 = vadd.f32 %v170_v28, %v164_v25 }
  0x37   : > { %v179_v31 = vadd.f32 %v178_v29, %v153_v27  ;;  %v185_v32 = vrot.slane %v171_v30, 4 }
  0x39   : > { %v180_v33 = vrot.slane %v179_v31, 2  ;;  %v186_v34 = vadd.f32 %v185_v32, %v171_v30 }
  0x3b   : > { %v181_v35 = vadd.f32 %v180_v33, %v179_v31  ;;  %v187_v36 = vrot.slane %v186_v34, 2 }
  0x3d   : > { %v182_v37 = vrot.slane %v181_v35, 1  ;;  %v188_v38 = vadd.f32 %v187_v36, %v186_v34 }
  0x3f   : > { %v183_v39 = vadd.f32 %v182_v37, %v181_v35  ;;  %v189_v40 = vrot.slane %v188_v38, 1 }
  0x41   : > { %197 = vrot.lane.b32.xlu1 %v183_v39, %s515_s21  ;;  %191 = vrot.lane.b32.xlu0 %v183_v39, %s516_s22  ;;  %v190_v41 = vadd.f32 %v189_v40, %v188_v38 }
  0x45   : > { %200 = vrot.lane.b32.xlu1 %v190_v41, %s515_s21  ;;  %194 = vrot.lane.b32.xlu0 %v190_v41, %s516_s22 }
  0x49   : > { %206 = vrot.lane.b32.xlu1 %v190_v41, %s517_s23  ;;  %203 = vrot.lane.b32.xlu0 %v183_v39, %s517_s23 }
  0xb3   : > { %v198_v42 = vpop.permute.xlu1 %197  ;;  %v192_v43 = vpop.permute.xlu0 %191 }
  0xb4   : > { %v193_v44 = vadd.f32 %v192_v43, %v183_v39 }
  0xb6   : > { %v199_v49 = vadd.f32 %v198_v42, %v193_v44 }
  0xb7   : > { %v201_v45 = vpop.permute.xlu1 %200  ;;  %v195_v46 = vpop.permute.xlu0 %194 }
  0xb8   : > { %v196_v47 = vadd.f32 %v195_v46, %v190_v41 }
  0xba   : > { %v202_v48 = vadd.f32 %v201_v45, %v196_v47 }
  0xbb   : > { %v207_v50 = vpop.permute.xlu1 %206  ;;  %v204_v51 = vpop.permute.xlu0 %203 }
  0xbc   : > { %v208_v52 = vadd.f32 %v207_v50, %v202_v48  ;;  %v205_v53 = vadd.f32 %v204_v51, %v199_v49 }
  0xbe   : > { %v210_v54 = vmul.f32 0.00390625, %v205_v53  ;;  %v211_v55 = vmul.f32 0.00390625, %v208_v52 }
  0xc0   : > { %v212_v56 = vmul.f32 %v210_v54, %v210_v54  ;;  %215 = vst [vmem:[#allocation4] sm:$0x1] %v210_v54 }
  0xc2   : > { %v213_v57 = vsub.f32 %v211_v55, %v212_v56 }
  0xc4   : > { %v214_v58 = vmax.f32 %v213_v57, 0.0 }
  0xc6   : > { %v216_v59 = vadd.f32 1e-05, %v214_v58 }
  0xc8   : > { %428 = vrsqrt.f32 %v216_v59 }
  0xd5   : > { %v429_v60 = vpop.eup %428 }
  0xd6   : > { %218 = vst [vmem:[#allocation5] sm:$0x1] %v429_v60 }
  0xd7 PF: > { %p367_p2 = scmp.ne.s32.totalorder %s502_s6, 1 }
  0xd9   : > { %222 = sbr.rel (%p367_p2) target bundleno = 232 (0xe8), region = 44 }
  0xde   : > { %v225_v61 = vld [vmem:[#allocation6] sm:$0xff]  ;;  %v368_v62 = vld [vmem:[#allocation4] ss:$0 sm:$0xff]  ;;  %v369_v63 = vld [vmem:[#allocation5] ss:$0 sm:$0xff] }
  0xdf   : > { %v240_v0 = vsub.f32 %v225_v61, %v368_v62  ;;  %v226_v1 = vld [vmem:[#allocation6 + $0x8] sm:$0xff]  ;;  %v227_v2 = vld [vmem:[#allocation6 + $0x10] sm:$0xff]  ;;  %v228_v3 = vld [vmem:[#allocation6 + $0x18] sm:$0xff] }
  0xe0   : > { %v241_v4 = vsub.f32 %v226_v1, %v368_v62  ;;  %v242_v5 = vsub.f32 %v227_v2, %v368_v62  ;;  %v243_v6 = vsub.f32 %v228_v3, %v368_v62  ;;  %v229_v7 = vld [vmem:[#allocation6 + $0x20] sm:$0xff]  ;;  %v230_v8 = vld [vmem:[#allocation6 + $0x28] sm:$0xff]  ;;  %v231_v9 = vld [vmem:[#allocation6 + $0x30] sm:$0xff] }
  0xe1   : > { %v255_v10 = vmul.f32 %v369_v63, %v240_v0  ;;  %v244_v11 = vsub.f32 %v229_v7, %v368_v62  ;;  %v245_v12 = vsub.f32 %v230_v8, %v368_v62  ;;  %v246_v13 = vsub.f32 %v231_v9, %v368_v62  ;;  %v232_v14 = vld [vmem:[#allocation6 + $0x38] sm:$0xff] }
  0xe2   : > { %v256_v15 = vmul.f32 %v369_v63, %v241_v4  ;;  %v257_v16 = vmul.f32 %v369_v63, %v242_v5  ;;  %v258_v17 = vmul.f32 %v369_v63, %v243_v6  ;;  %v247_v18 = vsub.f32 %v232_v14, %v368_v62 }
  0xe3   : > { %263 = vst [vmem:[#allocation9] sm:$0xff] %v255_v10  ;;  %v259_v19 = vmul.f32 %v369_v63, %v244_v11  ;;  %v260_v20 = vmul.f32 %v369_v63, %v245_v12  ;;  %v261_v21 = vmul.f32 %v369_v63, %v246_v13 }
  0xe4   : > { %264 = vst [vmem:[#allocation9 + $0x8] sm:$0xff] %v256_v15  ;;  %265 = vst [vmem:[#allocation9 + $0x10] sm:$0xff] %v257_v16  ;;  %v262_v22 = vmul.f32 %v369_v63, %v247_v18 }
  0xe5   : > { %266 = vst [vmem:[#allocation9 + $0x18] sm:$0xff] %v258_v17  ;;  %267 = vst [vmem:[#allocation9 + $0x20] sm:$0xff] %v259_v19 }
  0xe6   : > { %268 = vst [vmem:[#allocation9 + $0x28] sm:$0xff] %v260_v20  ;;  %269 = vst [vmem:[#allocation9 + $0x30] sm:$0xff] %v261_v21 }
  0xe7   : > { %270 = vst [vmem:[#allocation9 + $0x38] sm:$0xff] %v262_v22 }
  0xe8 PF: > { %p580_p3 = scmp.eq.s32.totalorder %s360_s9, 1  ;;  %s518_s25 = smov [#allocation9]  }
  0xe9   : > { %s286_s26 = sshll.u32 %s518_s25, 4  ;;  %s287_s26 = int_to_ptr.vmem [resolvable:$true] %s286_s26 }
  0xea   : > { %s456_s27 = scalar_lea.vmem %s287_s26, 1024  ;;  %s462_s28 = scalar_lea.vmem %s287_s26, 2048 }
  0xeb   : > { %p457_p4 = scmp.ne.s32.totalorder %s287_s26, %s456_s27  ;;  %p463_p7 = scmp.lt.s32.totalorder %s287_s26, %s287_s26 }
  0xec   : > { %p464_p8 = scmp.lt.s32.totalorder %s462_s28, %s456_s27 }
  0xed   : > { %p458_p5 = pnand %p457_p4, %p580_p3 }
  0xee   : > { %p465_p9 = por %p464_p8, %p463_p7 }
  0xef   : > { %p459_p6 = pneg %p458_p5 }
  0xf1   : > { %p466_p10 = pnand %p465_p9, %p459_p6 }
  0xf3   : > { %469 = shalt.err (!%p466_p10)
}
  0xf4   : > { %s519_s29 = smov 128   ;;  %s520_s30 = smov 8  }
  0xf5   : > { %379 = dma.vmem_to_hbm [thread:$0]  (%p580_p3), %s287_s26, 1024, %s604_s1, [#allocation8], %s519_s29, %s519_s29, %s520_s30  }
  0xf6 PF: > { %p393_p11 = scmp.ge.s32.totalorder %s510_s8, 2  ;;  %p394_p12 = scmp.eq.s32.totalorder %s361_s10, 1 }
  0xf8   : > { %p387_p13 = pnand %p394_p12, %p393_p11 }
  0xfa   : > { %p388_p0 = pneg %p387_p13 }
  0xfc   : > { %497 = dma.done.wait (%p388_p0), [#allocation8], 1024  }
  0xfd   : > { %499 = vsyncadd (%p388_p0), [#allocation8], 4294966272  ;;  %s15_s8 = sadd.s32 1, %s510_s8   ;;  %s608_s6 = smov %s506_s7 }
  0xfe   : > { %p12_p1 = scmp.ge.s32.totalorder %s15_s8, 4   ;;  %s609_s7 = smov %s611_s11 }
 0x100   :  { %14 = sbr.rel (!%p12_p1) target bundleno = 4 (0x4), region = 79 }
 0x105   :  { %307 = vsyncpa [#allocation7], 1 }
 0x106   :  { %309 = vsyncpa [#allocation7 + $0x1], 1 }
 0x107   :  { %310 = vsyncpa [#allocation8], 1 }
 0x108   :  { %312 = vsyncpa [#allocation8 + $0x1], 1 }

</bundles_post_ra>
